<compile_context>
chip_gen: v5e
topology: v5e:2x2
jax: 0.10.0
libtpu: 0.0.40
codegen_flags: <defaults>
</compile_context>

<pallas_src>
import functools

import numpy as np
import jax
import jax.numpy as jnp
from jax.experimental import pallas as pl
from jax.experimental.pallas import tpu as pltpu


def dense_layer_kernel(x_ref, w_ref, b_ref, rc_ref, o_ref, *, H, W):
    """One batch element per grid step.

    x_ref : (1, Cin, H*W)        input; channels on sublanes, pixels on lanes
    w_ref : (Cout, 9*Cin)        conv weights, tap-major / in-channel-minor
    b_ref : (Cout, 1)            conv bias
    rc_ref: (2, H*W) int32       [row index ; col index] of each flat pixel
    o_ref : (1, Cin+Cout, H*W)   cat(x, relu(conv3x3(x))) along channels
    """
    HW = H * W

    x = x_ref[0].astype(jnp.float32)          # (Cin, HW)
    row = rc_ref[0:1, :]                      # (1, HW) int32
    col = rc_ref[1:2, :]                      # (1, HW) int32

    # Build the 9 shifted taps of the 3x3 stencil with lane rotations plus
    # boundary masks (emulating SAME zero padding), fused into one im2col slab.
    taps = []
    for dy in (-1, 0, 1):
        if dy < 0:
            row_ok = row >= 1
        elif dy > 0:
            row_ok = row <= H - 2
        else:
            row_ok = None
        for dx in (-1, 0, 1):
            if dx < 0:
                col_ok = col >= 1
            elif dx > 0:
                col_ok = col <= W - 2
            else:
                col_ok = None

            off = dy * W + dx                       # flat shift of this tap
            if off == 0:
                shifted = x
            else:
                shifted = pltpu.roll(x, shift=(-off) % HW, axis=1)

            if row_ok is not None and col_ok is not None:
                mask = jnp.logical_and(row_ok, col_ok)
            elif row_ok is not None:
                mask = row_ok
            else:
                mask = col_ok
            if mask is not None:
                shifted = jnp.where(mask, shifted, 0.0)
            taps.append(shifted)

    im2col = jnp.concatenate(taps, axis=0)          # (9*Cin, HW)

    # Single MXU contraction: (Cout, 9*Cin) x (9*Cin, HW) -> (Cout, HW).
    acc = jax.lax.dot_general(
        w_ref[...].astype(jnp.float32), im2col,
        dimension_numbers=(((1,), (0,)), ((), ())),
        preferred_element_type=jnp.float32)

    acc = jnp.maximum(acc + b_ref[...].astype(jnp.float32), 0.0)   # bias + ReLU

    # Channel concat along sublanes; one lane-dense store of the full tile.
    o_ref[0] = jnp.concatenate([x, acc], axis=0).astype(o_ref.dtype)


def dense_layer_forward(x_nchw, w_oihw, bias):
    """x_nchw: (N, Cin, H, W); w_oihw: (Cout, Cin, 3, 3) PyTorch layout; bias: (Cout,)."""
    N, Cin, H, W = x_nchw.shape
    Cout = w_oihw.shape[0]
    HW = H * W

    # Free, layout-preserving reshape (contiguous NCHW -> N, C, H*W).
    x_flat = x_nchw.reshape(N, Cin, HW)

    # (Cout, Cin, 3, 3) -> (Cout, 3, 3, Cin) -> (Cout, 9*Cin): tap-major,
    # in-channel-minor, matching the im2col row ordering built in the kernel.
    wmat = jnp.transpose(w_oihw, (0, 2, 3, 1)).reshape(Cout, 9 * Cin)
    b2 = bias.reshape(Cout, 1)

    # Static row/col index of every flattened pixel (for boundary masks).
    pos = np.arange(HW, dtype=np.int32)
    rowcol = jnp.asarray(np.stack([pos // W, pos % W], axis=0))    # (2, HW)

    kernel = functools.partial(dense_layer_kernel, H=H, W=W)

    out_flat = pl.pallas_call(
        kernel,
        out_shape=jax.ShapeDtypeStruct((N, Cin + Cout, HW), x_nchw.dtype),
        grid_spec=pltpu.PrefetchScalarGridSpec(
            num_scalar_prefetch=0,
            grid=(N,),
            in_specs=[
                pl.BlockSpec((1, Cin, HW), lambda n: (n, 0, 0)),
                pl.BlockSpec((Cout, 9 * Cin), lambda n: (0, 0)),
                pl.BlockSpec((Cout, 1), lambda n: (0, 0)),
                pl.BlockSpec((2, HW), lambda n: (0, 0)),
            ],
            out_specs=pl.BlockSpec((1, Cin + Cout, HW), lambda n: (n, 0, 0)),
        ),
        compiler_params=pltpu.CompilerParams(
            dimension_semantics=("parallel",)),
    )(x_flat, wmat, b2, rowcol)

    # Free reshape back to the external NCHW contract.
    return out_flat.reshape(N, Cin + Cout, H, W)


def _reference(x_nchw, w_oihw, bias):
    """Pure-JAX reference matching PyTorch dense_layer.forward."""
    conv = jax.lax.conv_general_dilated(
        x_nchw, w_oihw, window_strides=(1, 1), padding="SAME",
        dimension_numbers=("NCHW", "OIHW", "NCHW"))
    act = jnp.maximum(conv + bias[None, :, None, None], 0.0)
    return jnp.concatenate([x_nchw, act], axis=1)


if __name__ == "__main__":
    # Module config consistent with dense_layer(in_channels, growthRate).
    N, Cin, H, W = 2, 4, 16, 16
    growth = 8   # growthRate (out_channels of the 3x3 conv)

    key = jax.random.PRNGKey(0)
    kx, kw, kb = jax.random.split(key, 3)

    x = jax.random.normal(kx, (N, Cin, H, W), dtype=jnp.float32)
    # PyTorch conv weight layout (Cout, Cin, 3, 3).
    w = jax.random.normal(kw, (growth, Cin, 3, 3), dtype=jnp.float32) * 0.1
    b = jax.random.normal(kb, (growth,), dtype=jnp.float32) * 0.1

    out = jax.block_until_ready(dense_layer_forward(x, w, b))
    ref = jax.block_until_ready(_reference(x, w, b))

    assert out.shape == (N, Cin + growth, H, W), out.shape
    assert jnp.allclose(out, ref, atol=1e-5, rtol=1e-5), "mismatch vs reference"
    print("KERNEL_OK")
</pallas_src>

<mosaic_0001>
module attributes {stable_mosaic.version = 11 : i64} {
  func.func @dense_layer_kernel(%arg0: i32, %arg1: memref<1x4x256xf32, #tpu.memory_space<vmem>>, %arg2: memref<8x36xf32, #tpu.memory_space<vmem>>, %arg3: memref<8x1xf32, #tpu.memory_space<vmem>>, %arg4: memref<2x256xi32, #tpu.memory_space<vmem>>, %arg5: memref<1x12x256xf32, #tpu.memory_space<vmem>>) attributes {dimension_semantics = [#tpu.dimension_semantics<parallel>], iteration_bounds = array<i64: 2>, scalar_prefetch = 0 : i64, scratch_operands = 0 : i64, tpu.core_type = #tpu.core_type<tc>, window_params = [{transform_indices = @transform_0, window_bounds = array<i64: 1, 4, 256>}, {pipeline_mode = #tpu.pipeline_mode<synchronous>, transform_indices = @transform_1, window_bounds = array<i64: 8, 36>}, {pipeline_mode = #tpu.pipeline_mode<synchronous>, transform_indices = @transform_2, window_bounds = array<i64: 8, 1>}, {pipeline_mode = #tpu.pipeline_mode<synchronous>, transform_indices = @transform_3, window_bounds = array<i64: 2, 256>}, {transform_indices = @transform_4, window_bounds = array<i64: 1, 12, 256>}]} {
    %c0 = arith.constant 0 : index
    %c0_0 = arith.constant 0 : index
    %c0_1 = arith.constant 0 : index
    %0 = vector.load %arg1[%c0, %c0_0, %c0_1] : memref<1x4x256xf32, #tpu.memory_space<vmem>>, vector<1x4x256xf32>
    %1 = vector.shape_cast %0 : vector<1x4x256xf32> to vector<4x256xf32>
    %c0_2 = arith.constant 0 : index
    %c0_3 = arith.constant 0 : index
    %2 = vector.load %arg4[%c0_2, %c0_3] : memref<2x256xi32, #tpu.memory_space<vmem>>, vector<1x256xi32>
    %c1 = arith.constant 1 : index
    %c0_4 = arith.constant 0 : index
    %3 = vector.load %arg4[%c1, %c0_4] : memref<2x256xi32, #tpu.memory_space<vmem>>, vector<1x256xi32>
    %c1_i32 = arith.constant 1 : i32
    %4 = vector.broadcast %c1_i32 : i32 to vector<1x256xi32>
    %5 = arith.cmpi sge, %2, %4 : vector<1x256xi32>
    %c1_i32_5 = arith.constant 1 : i32
    %6 = vector.broadcast %c1_i32_5 : i32 to vector<1x256xi32>
    %7 = arith.cmpi sge, %3, %6 : vector<1x256xi32>
    %c17_i32 = arith.constant 17 : i32
    %8 = tpu.dynamic_rotate %1 by %c17_i32 dim 1 : vector<4x256xf32>, i32 -> vector<4x256xf32>
    %9 = arith.andi %5, %7 : vector<1x256xi1>
    %cst = arith.constant 0.000000e+00 : f32
    %10 = vector.shape_cast %9 : vector<1x256xi1> to vector<1x256xi1>
    %11 = vector.broadcast %10 : vector<1x256xi1> to vector<4x256xi1>
    %12 = vector.broadcast %cst : f32 to vector<4x256xf32>
    %13 = arith.select %11, %8, %12 : vector<4x256xi1>, vector<4x256xf32>
    %c16_i32 = arith.constant 16 : i32
    %14 = tpu.dynamic_rotate %1 by %c16_i32 dim 1 : vector<4x256xf32>, i32 -> vector<4x256xf32>
    %cst_6 = arith.constant 0.000000e+00 : f32
    %15 = vector.shape_cast %5 : vector<1x256xi1> to vector<1x256xi1>
    %16 = vector.broadcast %15 : vector<1x256xi1> to vector<4x256xi1>
    %17 = vector.broadcast %cst_6 : f32 to vector<4x256xf32>
    %18 = arith.select %16, %14, %17 : vector<4x256xi1>, vector<4x256xf32>
    %c14_i32 = arith.constant 14 : i32
    %19 = vector.broadcast %c14_i32 : i32 to vector<1x256xi32>
    %20 = arith.cmpi sle, %3, %19 : vector<1x256xi32>
    %c15_i32 = arith.constant 15 : i32
    %21 = tpu.dynamic_rotate %1 by %c15_i32 dim 1 : vector<4x256xf32>, i32 -> vector<4x256xf32>
    %22 = arith.andi %5, %20 : vector<1x256xi1>
    %cst_7 = arith.constant 0.000000e+00 : f32
    %23 = vector.shape_cast %22 : vector<1x256xi1> to vector<1x256xi1>
    %24 = vector.broadcast %23 : vector<1x256xi1> to vector<4x256xi1>
    %25 = vector.broadcast %cst_7 : f32 to vector<4x256xf32>
    %26 = arith.select %24, %21, %25 : vector<4x256xi1>, vector<4x256xf32>
    %c1_i32_8 = arith.constant 1 : i32
    %27 = vector.broadcast %c1_i32_8 : i32 to vector<1x256xi32>
    %28 = arith.cmpi sge, %3, %27 : vector<1x256xi32>
    %c1_i32_9 = arith.constant 1 : i32
    %29 = tpu.dynamic_rotate %1 by %c1_i32_9 dim 1 : vector<4x256xf32>, i32 -> vector<4x256xf32>
    %cst_10 = arith.constant 0.000000e+00 : f32
    %30 = vector.shape_cast %28 : vector<1x256xi1> to vector<1x256xi1>
    %31 = vector.broadcast %30 : vector<1x256xi1> to vector<4x256xi1>
    %32 = vector.broadcast %cst_10 : f32 to vector<4x256xf32>
    %33 = arith.select %31, %29, %32 : vector<4x256xi1>, vector<4x256xf32>
    %c14_i32_11 = arith.constant 14 : i32
    %34 = vector.broadcast %c14_i32_11 : i32 to vector<1x256xi32>
    %35 = arith.cmpi sle, %3, %34 : vector<1x256xi32>
    %c255_i32 = arith.constant 255 : i32
    %36 = tpu.dynamic_rotate %1 by %c255_i32 dim 1 : vector<4x256xf32>, i32 -> vector<4x256xf32>
    %cst_12 = arith.constant 0.000000e+00 : f32
    %37 = vector.shape_cast %35 : vector<1x256xi1> to vector<1x256xi1>
    %38 = vector.broadcast %37 : vector<1x256xi1> to vector<4x256xi1>
    %39 = vector.broadcast %cst_12 : f32 to vector<4x256xf32>
    %40 = arith.select %38, %36, %39 : vector<4x256xi1>, vector<4x256xf32>
    %c14_i32_13 = arith.constant 14 : i32
    %41 = vector.broadcast %c14_i32_13 : i32 to vector<1x256xi32>
    %42 = arith.cmpi sle, %2, %41 : vector<1x256xi32>
    %c1_i32_14 = arith.constant 1 : i32
    %43 = vector.broadcast %c1_i32_14 : i32 to vector<1x256xi32>
    %44 = arith.cmpi sge, %3, %43 : vector<1x256xi32>
    %c241_i32 = arith.constant 241 : i32
    %45 = tpu.dynamic_rotate %1 by %c241_i32 dim 1 : vector<4x256xf32>, i32 -> vector<4x256xf32>
    %46 = arith.andi %42, %44 : vector<1x256xi1>
    %cst_15 = arith.constant 0.000000e+00 : f32
    %47 = vector.shape_cast %46 : vector<1x256xi1> to vector<1x256xi1>
    %48 = vector.broadcast %47 : vector<1x256xi1> to vector<4x256xi1>
    %49 = vector.broadcast %cst_15 : f32 to vector<4x256xf32>
    %50 = arith.select %48, %45, %49 : vector<4x256xi1>, vector<4x256xf32>
    %c240_i32 = arith.constant 240 : i32
    %51 = tpu.dynamic_rotate %1 by %c240_i32 dim 1 : vector<4x256xf32>, i32 -> vector<4x256xf32>
    %cst_16 = arith.constant 0.000000e+00 : f32
    %52 = vector.shape_cast %42 : vector<1x256xi1> to vector<1x256xi1>
    %53 = vector.broadcast %52 : vector<1x256xi1> to vector<4x256xi1>
    %54 = vector.broadcast %cst_16 : f32 to vector<4x256xf32>
    %55 = arith.select %53, %51, %54 : vector<4x256xi1>, vector<4x256xf32>
    %c14_i32_17 = arith.constant 14 : i32
    %56 = vector.broadcast %c14_i32_17 : i32 to vector<1x256xi32>
    %57 = arith.cmpi sle, %3, %56 : vector<1x256xi32>
    %c239_i32 = arith.constant 239 : i32
    %58 = tpu.dynamic_rotate %1 by %c239_i32 dim 1 : vector<4x256xf32>, i32 -> vector<4x256xf32>
    %59 = arith.andi %42, %57 : vector<1x256xi1>
    %cst_18 = arith.constant 0.000000e+00 : f32
    %60 = vector.shape_cast %59 : vector<1x256xi1> to vector<1x256xi1>
    %61 = vector.broadcast %60 : vector<1x256xi1> to vector<4x256xi1>
    %62 = vector.broadcast %cst_18 : f32 to vector<4x256xf32>
    %63 = arith.select %61, %58, %62 : vector<4x256xi1>, vector<4x256xf32>
    %64 = tpu.concatenate %13, %18, %26, %33, %1, %40, %50, %55, %63 in 0 : vector<4x256xf32>, vector<4x256xf32>, vector<4x256xf32>, vector<4x256xf32>, vector<4x256xf32>, vector<4x256xf32>, vector<4x256xf32>, vector<4x256xf32>, vector<4x256xf32> -> vector<36x256xf32>
    %c0_19 = arith.constant 0 : index
    %c0_20 = arith.constant 0 : index
    %65 = vector.load %arg2[%c0_19, %c0_20] : memref<8x36xf32, #tpu.memory_space<vmem>>, vector<8x36xf32>
    %cst_21 = arith.constant dense<0.000000e+00> : vector<8x256xf32>
    %66 = tpu.matmul %65, %64, %cst_21 {dimension_numbers = #tpu.dot_dimension_numbers<[1], [0], [0], [1], [0, 0, 1, 1], [], []>} : vector<8x36xf32>, vector<36x256xf32>, vector<8x256xf32> -> vector<8x256xf32>
    %c0_22 = arith.constant 0 : index
    %c0_23 = arith.constant 0 : index
    %67 = vector.load %arg3[%c0_22, %c0_23] : memref<8x1xf32, #tpu.memory_space<vmem>>, vector<8x1xf32>
    %68 = vector.broadcast %67 : vector<8x1xf32> to vector<8x256xf32>
    %69 = arith.addf %66, %68 : vector<8x256xf32>
    %cst_24 = arith.constant 0.000000e+00 : f32
    %70 = vector.broadcast %cst_24 : f32 to vector<8x256xf32>
    %71 = arith.maximumf %69, %70 : vector<8x256xf32>
    %72 = tpu.concatenate %1, %71 in 0 : vector<4x256xf32>, vector<8x256xf32> -> vector<12x256xf32>
    %c0_25 = arith.constant 0 : index
    %c0_26 = arith.constant 0 : index
    %c0_27 = arith.constant 0 : index
    %73 = vector.load %arg5[%c0_25, %c0_26, %c0_27] : memref<1x12x256xf32, #tpu.memory_space<vmem>>, vector<1x12x256xf32>
    %74 = vector.shape_cast %73 : vector<1x12x256xf32> to vector<12x256xf32>
    %75 = vector.shape_cast %72 : vector<12x256xf32> to vector<1x12x256xf32>
    tpu.vector_store %arg5[%c0_25, %c0_26, %c0_27], %75 {strides = array<i32>} : memref<1x12x256xf32, #tpu.memory_space<vmem>>, vector<1x12x256xf32>,
    return
  }
  func.func @transform_0(%arg0: i32) -> (i32, i32, i32) {
    %c0_i32 = arith.constant 0 : i32
    %c0_i32_0 = arith.constant 0 : i32
    %c0_i32_1 = arith.constant 0 : i32
    return %arg0, %c0_i32, %c0_i32_0 : i32, i32, i32
  }
  func.func @transform_1(%arg0: i32) -> (i32, i32) {
    %c0_i32 = arith.constant 0 : i32
    %c0_i32_0 = arith.constant 0 : i32
    %c0_i32_1 = arith.constant 0 : i32
    return %c0_i32, %c0_i32_0 : i32, i32
  }
  func.func @transform_2(%arg0: i32) -> (i32, i32) {
    %c0_i32 = arith.constant 0 : i32
    %c0_i32_0 = arith.constant 0 : i32
    %c0_i32_1 = arith.constant 0 : i32
    return %c0_i32, %c0_i32_0 : i32, i32
  }
  func.func @transform_3(%arg0: i32) -> (i32, i32) {
    %c0_i32 = arith.constant 0 : i32
    %c0_i32_0 = arith.constant 0 : i32
    %c0_i32_1 = arith.constant 0 : i32
    return %c0_i32, %c0_i32_0 : i32, i32
  }
  func.func @transform_4(%arg0: i32) -> (i32, i32, i32) {
    %c0_i32 = arith.constant 0 : i32
    %c0_i32_0 = arith.constant 0 : i32
    %c0_i32_1 = arith.constant 0 : i32
    return %arg0, %c0_i32, %c0_i32_0 : i32, i32, i32
  }
}

</mosaic_0001>

<bundles_post_ra>
// kernel: tpu_custom_call.1
= control target key start
LH: loop header
LB: loop body
LE: loop exit
PB: predicated region body
PF: predicated region fallthrough
CT: control target
= control target key end

     0   :  { %9 = vsyncpa [#allocation3], 0  ;;  %s1146_s0 = inlined_call_operand.hbm [shape: f32[2,4,256], index: 0, kind: input, shape index: {}]   ;;  %s1147_s1 = inlined_call_operand.vmem [shape: f32[8,36], index: 1, kind: input, shape index: {}]   ;;  %s1148_s2 = inlined_call_operand.vmem [shape: f32[8,1], index: 2, kind: input, shape index: {}]   ;;  %s1149_s3 = inlined_call_operand.hbm [shape: s32[2,256], index: 3, kind: input, shape index: {}]   ;;  %s1150_s4 = inlined_call_operand.vmem [shape: f32[2,12,256], index: 4, kind: output, shape index: {}]  }
   0x1   :  { %11 = vsyncpa [#allocation3 + $0x1], 0 }
   0x2   :  { %12 = vsyncpa [#allocation5], 0  ;;  %s841_s15 = smov 0   ;;  %s843_s16 = smov 0  }
   0x3   :  { %s845_s17 = smov 0   ;;  %s847_s18 = smov 0  }
   0x4 LB: > { %s860_s19 = sadd.s32 4294967295, %s804_s18   ;;  %p38_p0 = scmp.ne.s32.totalorder %s796_s16, %s792_s15  ;;  %s804_s18 = sphi %s847_s18, %s1189_s18   ;;  %s800_s17 = sphi %s845_s17, %s1188_s17   ;;  %s796_s16 = sphi %s843_s16, %s1187_s16   ;;  %s792_s15 = sphi %s841_s15, %s1186_s15  }
   0x5   : > { %p39_p1 = scmp.eq.s32.totalorder %s860_s19, 0  ;;  %p592_p2 = scmp.ge.s32.totalorder %s804_s18, 1 }
   0x6   : > { %p138_p3 = scmp.lt.s32.totalorder %s804_s18, 3  ;;  %s156_s23 = sshll.u32 %s1149_s3, 4  ;;  %s157_s23 = int_to_ptr.hbm [resolvable:$true] %s156_s23 }
   0x7   : > { %p868_p4 = por %p39_p1, %p38_p0  ;;  %s806_s25 = smov [#allocation4]  }
   0x8   : > { %p875_p5 = pnand %p592_p2, %p138_p3  ;;  %s158_s26 = sshll.u32 %s806_s25, 4  ;;  %s159_s26 = int_to_ptr.vmem [resolvable:$true] %s158_s26 }
   0x9   : > { %s884_s27 = sadd.s32 1, %s804_s18   ;;  %s25_s28 = sadd.s32 1, %s800_s17 }
   0xa   : > { %p617_p6 = pneg %p875_p5  ;;  %s22_s29 = ssub.s32 %s804_s18, %s884_s27 }
   0xb   : > { %p23_p8 = scmp.eq.s32.totalorder %s22_s29, 0  ;;  %p32_p9 = scmp.ne.s32.totalorder %s800_s17, %s796_s16 }
   0xc   : > { %p618_p7 = pnand %p617_p6, %p39_p1  ;;  %p33_p10 = scmp.eq.s32.totalorder %s804_s18, 0 }
   0xd   : > { %p626_p11 = scmp.lt.s32.totalorder %s804_s18, 2  ;;  %s169_s5 = sand.u32 1, %s800_s17  }
   0xe   : > { %620 = dma.hbm_to_vmem [thread:$0]  (!%p618_p7), %s157_s23, 64, %s159_s26, [#allocation5]  }
   0xf   : > { %s894_s30 = scalar_select %p23_p8, %s800_s17, %s25_s28  }
  0x10   : > { %p34_p12 = por %p33_p10, %p32_p9  ;;  %s595_s6 = sshll.u32 %s169_s5, 3 }
  0x11   : > { %s609_s7 = sshll.u32 %s804_s18, 3  ;;  %s173_s11 = scalar_lea.vmem [#allocation2], %s595_s6 }
  0x12   : > { %s178_s10 = scalar_lea.hbm %s1146_s0, %s609_s7  ;;  %s182_s12 = sshll.u32 %s173_s11, 4  ;;  %s183_s12 = int_to_ptr.vmem [resolvable:$true] %s182_s12 }
  0x13   : > { %s180_s13 = sshll.u32 %s178_s10, 4  ;;  %p901_p13 = pnand %p626_p11, %p34_p12  ;;  %s181_s13 = int_to_ptr.hbm [resolvable:$true] %s180_s13 }
  0x14   : > { %s170_s15 = scalar_lea.sflag [#allocation3], %s169_s5  ;;  %s736_s21 = sshra.s32 %s181_s13, 4  ;;  %s737_s21 = int_to_ptr.hbm [resolvable:$true] %s736_s21 }
  0x15   : > { %s738_s22 = scalar_lea.hbm %s737_s21, 8  ;;  %p740_p2 = pneg %p901_p13 }
  0x16   : > { %p739_p0 = scmp.ne.s32.totalorder %s737_s21, %s738_s22  ;;  %s743_s25 = scalar_lea.hbm %s1146_s0, 16 }
  0x17   : > { %p744_p7 = scmp.lt.s32.totalorder %s737_s21, %s1146_s0  ;;  %p745_p8 = scmp.lt.s32.totalorder %s743_s25, %s738_s22 }
  0x18   : > { %p741_p3 = pnand %p740_p2, %p739_p0 }
  0x19   : > { %p746_p9 = por %p745_p8, %p744_p7 }
  0x1a   : > { %p742_p6 = pneg %p741_p3 }
  0x1c   : > { %p747_p10 = pnand %p746_p9, %p742_p6 }
  0x1e   : > { %750 = shalt.err (!%p747_p10)
}
  0x1f   : > { %624 = dma.hbm_to_vmem [thread:$0]  (!%p901_p13), %s181_s13, 128, %s183_s12, %s170_s15  }
  0x20   : > { %191 = sbr.rel (%p875_p5) target bundleno = 374 (0x176), region = 36  ;;  %s193_s29 = sand.u32 (!%p875_p5), 1, %s796_s16  }
  0x21   : > { %s599_s5 = sshll.u32 (!%p875_p5), %s193_s29, 3  ;;  %s194_s6 = scalar_lea.sflag (!%p875_p5), [#allocation3], %s193_s29 }
  0x22   : > { %s197_s7 = scalar_lea.vmem (!%p875_p5), [#allocation2], %s599_s5 }
  0x25   : > { %783 = dma.done.wait (%p868_p4), %s194_s6, 128  }
  0x26   : > { %785 = vsyncadd (%p868_p4), %s194_s6, 4294967168 }
  0x27   : > { %787 = dma.done.wait (%p39_p1), [#allocation5], 64  }
  0x28   : > { %789 = vsyncadd (%p39_p1), [#allocation5], 4294967232  ;;  %v233_v0 = vld [vmem:[%s197_s7] sm:$0xff]  ;;  %s807_s20 = smov 127   ;;  %s808_s24 = smov 1   ;;  %v815_v24 = vmov 0   ;;  %v249_v30 = vlaneseq }
  0x29   : > { %240 = vst [vmem:[#allocation1] ss:$2 sm:$0xff] %v233_v0  ;;  %s809_s8 = smov 113   ;;  %s810_s9 = smov 112   ;;  %705 = vset.pattern.permute.xlu0 %v815_v24  ;;  %v439_v37 = vld [vmem:[%s1148_s2] sm:$0xff]  ;;  %vm429_vm14 = vcmask 1043456  }
  0x2a   : > { %s811_s10 = smov 17   ;;  %s812_s11 = smov 111   ;;  %v931_v28 = vld [vmem:[#allocation4] ss:$2 sm:$0x3]  ;;  %v949_v35 = vand.u32 127, %v249_v30 }
  0x2b   : > { %s813_s12 = smov 15   ;;  %s814_s13 = smov 16   ;;  %v933_v29 = vld [vmem:[#allocation4 + $0x1] ss:$2 sm:$0x3]  ;;  %vm340_vm1 = vcmp.le.s32.totalorder %v931_v28, 14 }
  0x2c   : > { %vm238_vm0 = vcmp.ge.s32.totalorder %v933_v29, 1  ;;  %vm281_vm2 = vcmp.le.s32.totalorder %v933_v29, 14  ;;  %v373_v31 = vsel %vm340_vm1, 1, %v815_v24  ;;  %vm350_vm4 = vcmp.lt.s32.totalorder %v949_v35, 113  ;;  %p228_p1 = scmp.lt.s32.totalorder %s860_s19, 1 }
  0x2d   : > { %vm353_vm3 = vmand %vm340_vm1, %vm238_vm0  ;;  %v333_v33 = vsel %vm281_vm2, 1, %v815_v24  ;;  %v374_v36 = vperm.slane %v373_v31, 0  ;;  %v375_v40 = vperm.slane %v373_v31, 1  ;;  %v314_v47 = vsel %vm238_vm0, 1, %v815_v24 }
  0x2e   : > { %v354_v34 = vsel %vm353_vm3, 1, %v815_v24  ;;  %v334_v41 = vperm.slane %v333_v33, 0  ;;  %vm392_vm5 = vmand %vm340_vm1, %vm281_vm2  ;;  %v335_v46 = vperm.slane %v333_v33, 1  ;;  %vm370_vm6 = vcmp.lt.s32.totalorder %v949_v35, 112  ;;  %s1191_s19 = smov (!%p228_p1, %s860_s19), 1 }
  0x2f   : > { %v355_v42 = vperm.slane %v354_v34, 0  ;;  %vm963_vm7 = vcmp.eq.s32.totalorder %v374_v36, 1  ;;  %v356_v49 = vperm.slane %v354_v34, 1  ;;  %vm330_vm8 = vcmp.lt.s32.totalorder %v949_v35, 127  ;;  %s610_s18 = sshll.u32 %s1191_s19, 5 }
  0x30   : > { %v241_v1 = vld.sshfl [vmem:[#allocation1] sm:$0xff pattern:$0x75316420]  ;;  %v242_v2 = vld.sshfl [vmem:[#allocation1 + $0x8] sm:$0xff pattern:$0x75316420]  ;;  %s232_s26 = scalar_lea.vmem %s1150_s4, %s610_s18 }
  0x31   : > { %262 = vst [vmem:[#allocation1] ss:$2 sm:$0xff] %v233_v0  ;;  %v700_v19 = vpack.i.bf16 %v242_v2, %v241_v1  ;;  %vm237_vm9 = vcmp.ge.s32.totalorder %v931_v28, 1  ;;  %vm973_vm10 = vcmp.eq.s32.totalorder %v375_v40, 1  ;;  %vm977_vm11 = vcmp.eq.s32.totalorder %v334_v41, 1 }
  0x32   : > { %v393_v53 = vsel %vm392_vm5, 1, %v815_v24  ;;  %vm982_vm12 = vcmp.eq.s32.totalorder %v355_v42, 1  ;;  %vm311_vm13 = vcmp.lt.s32.totalorder %v949_v35, 1  ;;  %v315_v55 = vperm.slane %v314_v47, 0  ;;  %vm294_vm1 = vmand %vm237_vm9, %vm281_vm2 }
  0x33   : > { %v316_v60 = vperm.slane %v314_v47, 1  ;;  %vm989_vm15 = vcmp.eq.s32.totalorder %v335_v46, 1  ;;  %v395_v1 = vperm.slane %v393_v53, 1  ;;  %vm997_vm3 = vcmp.eq.s32.totalorder %v356_v49, 1  ;;  %vm254_vm5 = vmand %vm237_vm9, %vm238_vm0 }
  0x34   : > { %v274_v33 = vsel %vm237_vm9, 1, %v815_v24  ;;  %vm251_vm0 = vcmp.lt.s32.totalorder %v949_v35, 17 }
  0x35   : > { %vm1018_vm2 = vcmp.eq.s32.totalorder %v316_v60, 1  ;;  %v275_v28 = vperm.slane %v274_v33, 0  ;;  %v276_v47 = vperm.slane %v274_v33, 1 }
  0x38   : > { %v263_v3 = vld.sshfl [vmem:[#allocation1] sm:$0xff pattern:$0x75316420]  ;;  %v264_v4 = vld.sshfl [vmem:[#allocation1 + $0x8] sm:$0xff pattern:$0x75316420] }
  0x39   : > { %282 = vst [vmem:[#allocation1] ss:$2 sm:$0xff] %v233_v0  ;;  %v690_v23 = vpack.i.bf16 %v264_v4, %v263_v3 }
  0x40   : > { %v283_v5 = vld.sshfl [vmem:[#allocation1] sm:$0xff pattern:$0x75316420]  ;;  %v284_v6 = vld.sshfl [vmem:[#allocation1 + $0x8] sm:$0xff pattern:$0x75316420] }
  0x41   : > { %302 = vst [vmem:[#allocation1] ss:$2 sm:$0xff] %v233_v0  ;;  %v695_v22 = vpack.i.bf16 %v284_v6, %v283_v5 }
  0x48   : > { %v303_v7 = vld.sshfl [vmem:[#allocation1] sm:$0xff pattern:$0x75316420]  ;;  %v304_v8 = vld.sshfl [vmem:[#allocation1 + $0x8] sm:$0xff pattern:$0x75316420] }
  0x49   : > { %321 = vst [vmem:[#allocation1] ss:$2 sm:$0xff] %v233_v0  ;;  %v670_v12 = vpack.i.bf16 %v304_v8, %v303_v7 }
  0x4b   : > { %671 = vrot.lane.b32.xlu2 %v670_v12, %s808_s24 }
  0x50   : > { %v322_v9 = vld.sshfl [vmem:[#allocation1] sm:$0xff pattern:$0x75316420]  ;;  %v323_v10 = vld.sshfl [vmem:[#allocation1 + $0x8] sm:$0xff pattern:$0x75316420] }
  0x51   : > { %v675_v11 = vpack.i.bf16 %v323_v10, %v322_v9  ;;  %341 = vst [vmem:[#allocation1] ss:$2 sm:$0xff] %v233_v0  ;;  %v295_v10 = vsel %vm294_vm1, 1, %v815_v24 }
  0x53   : > { %676 = vrot.lane.b32.xlu1 %v675_v11, %s807_s20 }
  0x58   : > { %v342_v13 = vld.sshfl [vmem:[#allocation1] sm:$0xff pattern:$0x75316420]  ;;  %v343_v14 = vld.sshfl [vmem:[#allocation1 + $0x8] sm:$0xff pattern:$0x75316420] }
  0x59   : > { %361 = vst [vmem:[#allocation1] ss:$2 sm:$0xff] %v233_v0  ;;  %v680_v15 = vpack.i.bf16 %v343_v14, %v342_v13 }
  0x5b   : > { %681 = vrot.lane.b32.xlu2 %v680_v15, %s809_s8 }
  0x60   : > { %v362_v16 = vld.sshfl [vmem:[#allocation1] sm:$0xff pattern:$0x75316420]  ;;  %v363_v17 = vld.sshfl [vmem:[#allocation1 + $0x8] sm:$0xff pattern:$0x75316420] }
  0x61   : > { %v685_v18 = vpack.i.bf16 %v363_v17, %v362_v16  ;;  %380 = vst [vmem:[#allocation1] ss:$2 sm:$0xff] %v233_v0 }
  0x63   : > { %686 = vrot.lane.b32.xlu0 %v685_v18, %s810_s9  ;;  %701 = vrot.lane.b32.xlu2 %v700_v19, %s811_s10 }
  0x68   : > { %v382_v20 = vld.sshfl [vmem:[#allocation1 + $0x8] sm:$0xff pattern:$0x75316420]  ;;  %v381_v21 = vld.sshfl [vmem:[#allocation1] sm:$0xff pattern:$0x75316420] }
  0x69   : > { %387 = vrot.lane.b32.xlu1 %v382_v20, %s812_s11  ;;  %412 = vst [vmem:[#allocation1] ss:$2 sm:$0xff] %v233_v0 }
  0x6b   : > { %385 = vrot.lane.b32.xlu0 %v381_v21, %s812_s11 }
  0x70   : > { %v927_v25 = vld.sshfl [vmem:[#allocation1] sm:$0xff pattern:$0x75316420]  ;;  %v929_v26 = vld.sshfl [vmem:[#allocation1 + $0x8] sm:$0xff pattern:$0x75316420] }
  0x71   : > { %696 = vrot.lane.b32.xlu1 %v695_v22, %s813_s12  ;;  %497 = vst [vmem:[#allocation1] ss:$2 sm:$0xff] %v233_v0  ;;  %v394_v0 = vperm.slane %v393_v53, 0 }
  0x73   : > { %691 = vrot.lane.b32.xlu0 %v690_v23, %s814_s13  ;;  %v296_v23 = vperm.slane %v295_v10, 0 }
  0x75   : > { %vm1066_vm9 = vcmp.eq.s32.totalorder %v296_v23, 1 }
  0x78   : > { %v498_v23 = vld.sshfl [vmem:[#allocation1] sm:$0xff pattern:$0x75316420] }
  0x7b   : > { %442 = vperm.xlu0 %705, %v439_v37  }
  0xa5   : > { %v672_v27 = vpop.permute.xlu2 %671 }
  0xa6   : > { %v674_v43 = vunpack.i.h.bf16 %v672_v27  ;;  %v673_v44 = vunpack.i.l.bf16 %v672_v27 }
  0xa8   : > { %v313_v3 = vsel %vm311_vm13, %v674_v43, %v673_v44  ;;  %v312_v7 = vsel %vm311_vm13, %v673_v44, %v674_v43 }
  0xa9   : > { %v320_v27 = vsel %vm1018_vm2, %v312_v7, 0.0 }
  0xb5   : > { %v682_v32 = vpop.permute.xlu2 %681 }
  0xb6   : > { %v684_v38 = vunpack.i.h.bf16 %v682_v32  ;;  %v683_v39 = vunpack.i.l.bf16 %v682_v32  ;;  %v255_v32 = vsel %vm254_vm5, 1, %v815_v24 }
  0xb7   : > { %v256_v24 = vperm.slane %v255_v32, 0  ;;  %v257_v46 = vperm.slane %v255_v32, 1 }
  0xb8   : > { %v971_v50 = vsel %vm350_vm4, %v683_v39, %v684_v38  ;;  %v352_v59 = vsel %vm350_vm4, %v684_v38, %v683_v39  ;;  %vm1007_vm4 = vcmp.eq.s32.totalorder %v315_v55, 1  ;;  %v297_v38 = vperm.slane %v295_v10, 1 }
  0xb9   : > { %v359_v12 = vsel %vm982_vm12, %v971_v50, 0.0  ;;  %v360_v14 = vsel %vm997_vm3, %v352_v59, 0.0  ;;  %vm1040_vm12 = vcmp.eq.s32.totalorder %v395_v1, 1  ;;  %v319_v20 = vsel %vm1007_vm4, %v313_v3, 0.0 }
  0xba   : > { %v408_v49 = vrot.slane %v319_v20, 4  ;;  %v409_v50 = vrot.slane %v320_v27, 4  ;;  %vm1081_vm13 = vcmp.eq.s32.totalorder %v256_v24, 1  ;;  %vm1091_vm1 = vcmp.eq.s32.totalorder %v257_v46, 1 }
  0xbb   : > { %vm1095_vm3 = vcmp.eq.s32.totalorder %v276_v47, 1  ;;  %vm445_vm4 = vcmask 293888   ;;  %v499_v27 = vld.sshfl [vmem:[#allocation1 + $0x8] sm:$0xff pattern:$0x75316420] }
  0xbd   : > { %v702_v19 = vpop.permute.xlu2 %701 }
  0xbe   : > { %v704_v37 = vunpack.i.h.bf16 %v702_v19  ;;  %v703_v43 = vunpack.i.l.bf16 %v702_v19 }
  0xc0   : > { %v252_v59 = vsel %vm251_vm0, %v703_v43, %v704_v37 }
  0xc1   : > { %v261_v10 = vsel %vm1091_vm1, %v252_v59, 0.0 }
  0xc5   : > { %v677_v45 = vpop.permute.xlu1 %676 }
  0xc6   : > { %v679_v56 = vunpack.i.h.bf16 %v677_v45  ;;  %v678_v57 = vunpack.i.l.bf16 %v677_v45 }
  0xc8   : > { %v331_v8 = vsel %vm330_vm8, %v678_v57, %v679_v56  ;;  %v332_v9 = vsel %vm330_vm8, %v679_v56, %v678_v57  ;;  %vm1036_vm8 = vcmp.eq.s32.totalorder %v394_v0, 1  ;;  %v253_v57 = vsel %vm251_vm0, %v704_v37, %v703_v43 }
  0xc9   : > { %v338_v21 = vsel %vm977_vm11, %v331_v8, 0.0  ;;  %v339_v22 = vsel %vm989_vm15, %v332_v9, 0.0  ;;  %vm271_vm11 = vcmp.lt.s32.totalorder %v949_v35, 16  ;;  %vm1085_vm15 = vcmp.eq.s32.totalorder %v275_v28, 1 }
  0xca   : > { %v419_v41 = vrot.slane %v338_v21, 4  ;;  %v420_v42 = vrot.slane %v339_v22, 4  ;;  %v260_v8 = vsel %vm1081_vm13, %v253_v57, 0.0 }
  0xcc   : > { %v434_v52 = vsel %vm429_vm14, %v927_v25, %v419_v41  ;;  %v435_v53 = vsel %vm429_vm14, %v929_v26, %v420_v42 }
  0xd5   : > { %v687_v58 = vpop.permute.xlu0 %686 }
  0xd6   : > { %v689_v61 = vunpack.i.h.bf16 %v687_v58  ;;  %v688_v62 = vunpack.i.l.bf16 %v687_v58 }
  0xd8   : > { %v371_v4 = vsel %vm370_vm6, %v688_v62, %v689_v61  ;;  %v372_v5 = vsel %vm370_vm6, %v689_v61, %v688_v62  ;;  %vm389_vm6 = vcmp.lt.s32.totalorder %v949_v35, 111 }
  0xd9   : > { %v378_v13 = vsel %vm963_vm7, %v371_v4, 0.0  ;;  %v379_v15 = vsel %vm973_vm10, %v372_v5, 0.0  ;;  %vm291_vm7 = vcmp.lt.s32.totalorder %v949_v35, 15  ;;  %vm1074_vm10 = vcmp.eq.s32.totalorder %v297_v38, 1  ;;  %v438_v35 = vld [vmem:[%s1147_s1] sm:$0xff] }
  0xda   : > { %v425_v30 = vrot.slane %v378_v13, 4  ;;  %v426_v31 = vrot.slane %v379_v15, 4 }
  0xdb   : > { %v388_v16 = vpop.permute.xlu1 %387 }
  0xdc   : > { %v436_v44 = vsel %vm429_vm14, %v359_v12, %v425_v30  ;;  %v437_v45 = vsel %vm429_vm14, %v360_v14, %v426_v31 }
  0xdd   : > { %v386_v29 = vpop.permute.xlu0 %385 }
  0xde   : > { %v390_v34 = vsel %vm389_vm6, %v386_v29, %v388_v16  ;;  %v391_v36 = vsel %vm389_vm6, %v388_v16, %v386_v29 }
  0xdf   : > { %v398_v39 = vsel %vm1036_vm8, %v390_v34, 0.0  ;;  %v399_v40 = vsel %vm1040_vm12, %v391_v36, 0.0 }
  0xe0   : > { %603 = vmatpush.msk.msra.mxu0 %vm429_vm14, %v398_v39  ;;  %605 = vmatpush.msk.msra.mxu1 %vm429_vm14, %v399_v40 }
  0xe2   : > { %467 = vmatpush.msra.mxu0 %v436_v44  ;;  %487 = vmatpush.msra.mxu1 %v437_v45 }
  0xe3   : > { %v697_v51 = vpop.permute.xlu1 %696 }
  0xe4   : > { %v699_v55 = vunpack.i.h.bf16 %v697_v51  ;;  %v698_v56 = vunpack.i.l.bf16 %v697_v51  ;;  %468 = vmatpush.msra.mxu0 %v434_v52  ;;  %488 = vmatpush.msra.mxu1 %v435_v53 }
  0xe5   : > { %v692_v25 = vpop.permute.xlu0 %691 }
  0xe6   : > { %v694_v62 = vunpack.i.h.bf16 %v692_v25  ;;  %v693_v63 = vunpack.i.l.bf16 %v692_v25  ;;  %v293_v0 = vsel %vm291_vm7, %v699_v55, %v698_v56  ;;  %v292_v1 = vsel %vm291_vm7, %v698_v56, %v699_v55 }
  0xe7   : > { %v300_v2 = vsel %vm1066_vm9, %v293_v0, 0.0  ;;  %v301_v3 = vsel %vm1074_vm10, %v292_v1, 0.0 }
  0xe8   : > { %v432_v4 = vsel %vm429_vm14, %v300_v2, %v408_v49  ;;  %v433_v5 = vsel %vm429_vm14, %v301_v3, %v409_v50  ;;  %v273_v6 = vsel %vm271_vm11, %v694_v62, %v693_v63  ;;  %v272_v7 = vsel %vm271_vm11, %v693_v63, %v694_v62 }
  0xe9   : > { %469 = vmatpush.msra.mxu0 %v432_v4  ;;  %489 = vmatpush.msra.mxu1 %v433_v5  ;;  %v279_v9 = vsel %vm1085_vm15, %v273_v6, 0.0  ;;  %v280_v11 = vsel %vm1095_vm3, %v272_v7, 0.0 }
  0xea   : > { %v402_v12 = vrot.slane %v279_v9, 4  ;;  %v403_v13 = vrot.slane %v280_v11, 4 }
  0xec   : > { %v430_v14 = vsel %vm429_vm14, %v260_v8, %v402_v12  ;;  %v431_v15 = vsel %vm429_vm14, %v261_v10, %v403_v13 }
  0xed   : > { %470 = vmatpush.msra.mxu0 %v430_v14  ;;  %490 = vmatpush.msra.mxu1 %v431_v15  ;;  %v443_v16 = vpop.permute.xlu0 %442 }
  0xee   : > { %604 = vmatmul.msk.f32.vlgmr.msra.gmra.mxu0 %vm445_vm4, %v438_v35  ;;  %606 = vmatmul.msk.f32.vlgmr.msra.gmra.mxu1 %vm445_vm4, %v438_v35 }
 0x16b   : > { %v472_v17 = vpop.f32.mrf.mxu0  ;;  %v492_v18 = vpop.f32.mrf.mxu1 }
 0x16c   : > { %v473_v19 = vadd.f32 %v472_v17, %v443_v16  ;;  %v493_v20 = vadd.f32 %v492_v18, %v443_v16 }
 0x16e   : > { %v495_v21 = vmax.f32 %v473_v19, 0.0  ;;  %v496_v22 = vmax.f32 %v493_v20, 0.0 }
 0x170   : > { %v504_v29 = vrot.slane %v495_v21, 4  ;;  %v505_v30 = vrot.slane %v496_v22, 4 }
 0x172   : > { %v508_v31 = vsel %vm429_vm14, %v498_v23, %v504_v29  ;;  %512 = vst [vmem:[%s232_s26 + $0x10] sm:$0xf] %v504_v29  ;;  %v509_v32 = vsel %vm429_vm14, %v499_v27, %v505_v30 }
 0x173   : > { %510 = vst [vmem:[%s232_s26] sm:$0xff] %v508_v31 }
 0x174   : > { %511 = vst [vmem:[%s232_s26 + $0x8] sm:$0xff] %v509_v32 }
 0x175   : > { %513 = vst [vmem:[%s232_s26 + $0x18] sm:$0xf] %v505_v30 }
 0x176 PF: > { %p15_p4 = scmp.ge.s32.totalorder %s884_s27, 4   ;;  %s1186_s15 = smov %s796_s16 }
 0x177   : > { %s1187_s16 = smov %s800_s17  ;;  %s1188_s17 = smov %s894_s30 }
 0x178   : > { %s1189_s18 = smov %s884_s27  ;;  %17 = sbr.rel (!%p15_p4) target bundleno = 4 (0x4), region = 81 }
 0x17d   :  { %535 = vsyncpa [#allocation3], 1 }
 0x17e   :  { %537 = vsyncpa [#allocation3 + $0x1], 1 }
 0x17f   :  { %538 = vsyncpa [#allocation5], 1 }

</bundles_post_ra>
